<compile_context>
chip_gen: v5e
topology: v5e:2x2
jax: 0.10.0
libtpu: 0.0.40
codegen_flags: <defaults>
</compile_context>

<pallas_src>
import jax
import jax.numpy as jnp
from jax import lax
from jax.experimental import pallas as pl
from jax.experimental.pallas import tpu as pltpu


def _round_up(x, m):
    return (x + m - 1) // m * m


def gnn_kernel(x_ref, a_ref, p_ref, out_ref):
    """Whole-batch GNN forward in one invocation (no grid).

    x_ref:   (B*N, H)       node features, graphs stacked along rows, features
                            zero-padded from F -> H columns.
    a_ref:   (B*N, B*N)     block-diagonal adjacency (before any +I).
    p_ref:   (4, rows, H)   packed params; per layer rows [0:H] = weight
                            (zero-padded), row H = bias (zero-padded).
    out_ref: (B, C)         class logits.
    """
    BN = a_ref.shape[0]
    B, C = out_ref.shape
    N = BN // B
    H = p_ref.shape[-1]

    A = a_ref[...]                                    # (BN, BN)
    # degree of (A + k*I) is degree(A) + k -> base row sums computed once.
    row_sum = jnp.sum(A, axis=-1, keepdims=True)      # (BN, 1)

    def gcn(h, layer, k):
        slab = p_ref[layer]                           # (rows, H), single load
        w = slab[:H, :]                               # (H, H); zero rows pad F->H
        b = slab[H:H + 1, :]                          # (1, H)
        hw = jnp.dot(h, w, preferred_element_type=jnp.float32) + b      # (BN, H)
        d = lax.rsqrt(row_sum + float(k))             # (BN, 1), EUP slot
        s = d * hw
        # (A + kI) @ s == A @ s + k*s  -> never materialize A+kI or L.
        return d * (jnp.dot(A, s, preferred_element_type=jnp.float32)
                    + float(k) * s)

    h1 = jnp.maximum(gcn(x_ref[...], 0, 1), 0.0)
    h2 = jnp.maximum(gcn(h1, 1, 2), 0.0)
    h3 = gcn(h2, 2, 3)
    # F.dropout in eval mode -> identity.

    # Per-graph mean pool as one MXU dot with a constant (B, BN) averaging
    # matrix built from iotas (avoids B XLU reductions + a concatenate copy).
    row = lax.broadcasted_iota(jnp.int32, (B, BN), 0)
    col = lax.broadcasted_iota(jnp.int32, (B, BN), 1)
    pool = jnp.where((col >= row * N) & (col < (row + 1) * N),
                     1.0 / float(N), 0.0).astype(jnp.float32)
    pooled = jnp.dot(pool, h3, preferred_element_type=jnp.float32)      # (B, H)

    head = p_ref[3]                                   # (rows, H)
    wfc = head[:H, :]                                 # (H, H); cols >= C are zero
    bfc = head[H:H + 1, :]                            # (1, H)
    logits = jnp.dot(pooled, wfc, preferred_element_type=jnp.float32) + bfc
    out_ref[...] = logits[:, :C].astype(out_ref.dtype)   # single small store


def pack_params(params, hidden):
    """Pack (w1,b1),(w2,b2),(w3,b3),(wfc,bfc) into one (4, rows, hidden) slab.

    Per layer: rows [0:hidden] hold the weight zero-padded to (hidden, hidden),
    row `hidden` holds the bias zero-padded to hidden; trailing rows pad the
    sublane count to a multiple of 8.
    """
    rows = _round_up(hidden + 1, 8)

    def one(w, b):
        s = jnp.zeros((rows, hidden), jnp.float32)
        s = s.at[:w.shape[0], :w.shape[1]].set(w.astype(jnp.float32))
        s = s.at[hidden, :b.shape[-1]].set(b.reshape(-1).astype(jnp.float32))
        return s

    return jnp.stack([one(params["w1"], params["b1"]),
                      one(params["w2"], params["b2"]),
                      one(params["w3"], params["b3"]),
                      one(params["wfc"], params["bfc"])])


def gnn_forward(x, A, params):
    B, N, F = x.shape
    H = params["w1"].shape[1]
    C = params["wfc"].shape[1]
    assert F <= H and C <= H, "param packing assumes in_features <= hidden and classes <= hidden"
    BN = B * N

    # Stack graphs along rows once; zero-pad features F -> H so the layer-0
    # weight shares the same (H, H) slab slot as the other layers.
    x_stack = jnp.zeros((BN, H), jnp.float32).at[:, :F].set(
        x.reshape(BN, F).astype(jnp.float32))

    # Block-diagonal adjacency: one (BN,BN)@(BN,H) MXU dot per layer replaces
    # B tiny per-graph dots + concatenates.  Only sensible while BN is small;
    # the scale-up path should keep per-graph tiling to avoid O((BN)^2) memory.
    A_bd = jnp.zeros((BN, BN), jnp.float32)
    for g in range(B):
        A_bd = lax.dynamic_update_slice(A_bd, A[g].astype(jnp.float32), (g * N, g * N))

    p_slab = pack_params(params, H)

    flops = (3 * (2 * BN * H * H + 2 * BN * BN * H)   # 3 layers: HW dot + A_bd dot
             + 2 * B * BN * H                          # pooling dot
             + 2 * B * H * H)                          # head dot
    bytes_accessed = 4 * (x_stack.size + A_bd.size + p_slab.size + B * C)

    # No grid: everything fits trivially in VMEM at these sizes, so a single
    # invocation removes all per-grid-step pipeline overhead; weights land in
    # VMEM exactly once.
    # TODO(synk): scale-up path — add a leading batch-block grid axis marked
    # "parallel" ONLY on v7x (2 TensorCores/chip); on v5e/v6e a grid is just a
    # serial loop adding ~0.35 us/step.  Re-derive A tiling against v7x's
    # 64 MiB VMEM (32 MiB default scoped limit) and set vmem_limit_bytes via
    # pltpu.CompilerParams.
    return pl.pallas_call(
        gnn_kernel,
        out_shape=jax.ShapeDtypeStruct((B, C), jnp.float32),
        in_specs=[pl.BlockSpec(memory_space=pltpu.MemorySpace.VMEM)] * 3,
        out_specs=pl.BlockSpec(memory_space=pltpu.MemorySpace.VMEM),
        cost_estimate=pl.CostEstimate(flops=flops,
                                      transcendentals=3 * BN,
                                      bytes_accessed=bytes_accessed),
    )(x_stack, A_bd, p_slab)


def init_params(key, in_features, hidden_dim, classes):
    """PyTorch nn.Linear-style init: U(-1/sqrt(fan_in), 1/sqrt(fan_in)).
    Weights stored as (in, out) == torch weight.T"""
    def linear(key, fan_in, fan_out):
        kw, kb = jax.random.split(key)
        bound = 1.0 / jnp.sqrt(jnp.float32(fan_in))
        w = jax.random.uniform(kw, (fan_in, fan_out), jnp.float32, -bound, bound)
        b = jax.random.uniform(kb, (1, fan_out), jnp.float32, -bound, bound)
        return w, b

    k1, k2, k3, k4 = jax.random.split(key, 4)
    w1, b1 = linear(k1, in_features, hidden_dim)
    w2, b2 = linear(k2, hidden_dim, hidden_dim)
    w3, b3 = linear(k3, hidden_dim, hidden_dim)
    wfc, bfc = linear(k4, hidden_dim, classes)
    return dict(w1=w1, b1=b1, w2=w2, b2=b2, w3=w3, b3=b3, wfc=wfc, bfc=bfc)


def gnn_reference(x, A, params):
    """Pure-JAX reference mirroring the PyTorch semantics (incl. in-place A+=I)."""
    def gcn(a_acc, h, w, b):
        N = a_acc.shape[-1]
        a_new = a_acc + jnp.eye(N, dtype=a_acc.dtype)
        d = jnp.power(jnp.sum(a_new, axis=-1), -0.5)
        D = jax.vmap(jnp.diag)(d)
        L = jnp.einsum("bij,bjk,bkl->bil", D, a_new, D)
        return a_new, jnp.einsum("bij,bjk->bik", L, h @ w + b)

    a1, h1 = gcn(A, x, params["w1"], params["b1"])
    h1 = jax.nn.relu(h1)
    a2, h2 = gcn(a1, h1, params["w2"], params["b2"])
    h2 = jax.nn.relu(h2)
    _, h3 = gcn(a2, h2, params["w3"], params["b3"])
    pooled = h3.mean(axis=1)
    return pooled @ params["wfc"] + params["bfc"]


if __name__ == "__main__":
    B, N = 2, 16          # batch of graphs, nodes per graph
    IN_FEATURES, HIDDEN, CLASSES = 7, 64, 2   # GNN defaults

    key = jax.random.PRNGKey(0)
    kx, ka, kp = jax.random.split(key, 3)

    x = jax.random.uniform(kx, (B, N, IN_FEATURES), dtype=jnp.float32)
    A = jax.random.bernoulli(ka, 0.5, (B, N, N)).astype(jnp.float32)
    params = init_params(kp, IN_FEATURES, HIDDEN, CLASSES)

    out = gnn_forward(x, A, params)
    out = jax.block_until_ready(out)

    ref = gnn_reference(x, A, params)
    assert out.shape == (B, CLASSES)
    assert jnp.allclose(out, ref, atol=2e-4, rtol=2e-4), (out, ref)

    print("KERNEL_OK")
</pallas_src>

<mosaic_0001>
module attributes {stable_mosaic.version = 11 : i64} {
  func.func @gnn_kernel(%arg0: memref<32x64xf32, #tpu.memory_space<vmem>>, %arg1: memref<32x32xf32, #tpu.memory_space<vmem>>, %arg2: memref<4x72x64xf32, #tpu.memory_space<vmem>>, %arg3: memref<2x2xf32, #tpu.memory_space<vmem>>) attributes {dimension_semantics = [], scalar_prefetch = 0 : i64, scratch_operands = 0 : i64, tpu.core_type = #tpu.core_type<tc>} {
    %c0 = arith.constant 0 : index
    %c0_0 = arith.constant 0 : index
    %0 = vector.load %arg1[%c0, %c0_0] : memref<32x32xf32, #tpu.memory_space<vmem>>, vector<32x32xf32>
    %cst = arith.constant dense<0.000000e+00> : vector<32xf32>
    %1 = vector.multi_reduction <add>, %0, %cst [1] : vector<32x32xf32> to vector<32xf32>
    %2 = vector.shape_cast %1 : vector<32xf32> to vector<32x1xf32>
    %c0_1 = arith.constant 0 : index
    %c0_2 = arith.constant 0 : index
    %3 = vector.load %arg0[%c0_1, %c0_2] : memref<32x64xf32, #tpu.memory_space<vmem>>, vector<32x64xf32>
    %c0_3 = arith.constant 0 : index
    %c0_4 = arith.constant 0 : index
    %c0_5 = arith.constant 0 : index
    %4 = vector.load %arg2[%c0_3, %c0_4, %c0_5] : memref<4x72x64xf32, #tpu.memory_space<vmem>>, vector<1x72x64xf32>
    %5 = vector.shape_cast %4 : vector<1x72x64xf32> to vector<72x64xf32>
    %6 = vector.extract_strided_slice %5 {offsets = [0, 0], sizes = [64, 64], strides = [1, 1]} : vector<72x64xf32> to vector<64x64xf32>
    %7 = vector.extract_strided_slice %5 {offsets = [64, 0], sizes = [1, 64], strides = [1, 1]} : vector<72x64xf32> to vector<1x64xf32>
    %cst_6 = arith.constant dense<0.000000e+00> : vector<32x64xf32>
    %8 = tpu.matmul %3, %6, %cst_6 {dimension_numbers = #tpu.dot_dimension_numbers<[1], [0], [0], [1], [0, 0, 1, 1], [], []>} : vector<32x64xf32>, vector<64x64xf32>, vector<32x64xf32> -> vector<32x64xf32>
    %9 = vector.broadcast %7 : vector<1x64xf32> to vector<32x64xf32>
    %10 = arith.addf %8, %9 : vector<32x64xf32>
    %cst_7 = arith.constant 1.000000e+00 : f32
    %11 = vector.broadcast %cst_7 : f32 to vector<32x1xf32>
    %12 = arith.addf %2, %11 : vector<32x1xf32>
    %13 = math.rsqrt %12 : vector<32x1xf32>
    %14 = vector.broadcast %13 : vector<32x1xf32> to vector<32x64xf32>
    %15 = arith.mulf %14, %10 : vector<32x64xf32>
    %cst_8 = arith.constant dense<0.000000e+00> : vector<32x64xf32>
    %16 = tpu.matmul %0, %15, %cst_8 {dimension_numbers = #tpu.dot_dimension_numbers<[1], [0], [0], [1], [0, 0, 1, 1], [], []>} : vector<32x32xf32>, vector<32x64xf32>, vector<32x64xf32> -> vector<32x64xf32>
    %cst_9 = arith.constant 1.000000e+00 : f32
    %17 = vector.broadcast %cst_9 : f32 to vector<32x64xf32>
    %18 = arith.mulf %17, %15 : vector<32x64xf32>
    %19 = arith.addf %16, %18 : vector<32x64xf32>
    %20 = vector.broadcast %13 : vector<32x1xf32> to vector<32x64xf32>
    %21 = arith.mulf %20, %19 : vector<32x64xf32>
    %cst_10 = arith.constant 0.000000e+00 : f32
    %22 = vector.broadcast %cst_10 : f32 to vector<32x64xf32>
    %23 = arith.maximumf %21, %22 : vector<32x64xf32>
    %c1 = arith.constant 1 : index
    %c0_11 = arith.constant 0 : index
    %c0_12 = arith.constant 0 : index
    %24 = vector.load %arg2[%c1, %c0_11, %c0_12] : memref<4x72x64xf32, #tpu.memory_space<vmem>>, vector<1x72x64xf32>
    %25 = vector.shape_cast %24 : vector<1x72x64xf32> to vector<72x64xf32>
    %26 = vector.extract_strided_slice %25 {offsets = [0, 0], sizes = [64, 64], strides = [1, 1]} : vector<72x64xf32> to vector<64x64xf32>
    %27 = vector.extract_strided_slice %25 {offsets = [64, 0], sizes = [1, 64], strides = [1, 1]} : vector<72x64xf32> to vector<1x64xf32>
    %cst_13 = arith.constant dense<0.000000e+00> : vector<32x64xf32>
    %28 = tpu.matmul %23, %26, %cst_13 {dimension_numbers = #tpu.dot_dimension_numbers<[1], [0], [0], [1], [0, 0, 1, 1], [], []>} : vector<32x64xf32>, vector<64x64xf32>, vector<32x64xf32> -> vector<32x64xf32>
    %29 = vector.broadcast %27 : vector<1x64xf32> to vector<32x64xf32>
    %30 = arith.addf %28, %29 : vector<32x64xf32>
    %cst_14 = arith.constant 2.000000e+00 : f32
    %31 = vector.broadcast %cst_14 : f32 to vector<32x1xf32>
    %32 = arith.addf %2, %31 : vector<32x1xf32>
    %33 = math.rsqrt %32 : vector<32x1xf32>
    %34 = vector.broadcast %33 : vector<32x1xf32> to vector<32x64xf32>
    %35 = arith.mulf %34, %30 : vector<32x64xf32>
    %cst_15 = arith.constant dense<0.000000e+00> : vector<32x64xf32>
    %36 = tpu.matmul %0, %35, %cst_15 {dimension_numbers = #tpu.dot_dimension_numbers<[1], [0], [0], [1], [0, 0, 1, 1], [], []>} : vector<32x32xf32>, vector<32x64xf32>, vector<32x64xf32> -> vector<32x64xf32>
    %cst_16 = arith.constant 2.000000e+00 : f32
    %37 = vector.broadcast %cst_16 : f32 to vector<32x64xf32>
    %38 = arith.mulf %37, %35 : vector<32x64xf32>
    %39 = arith.addf %36, %38 : vector<32x64xf32>
    %40 = vector.broadcast %33 : vector<32x1xf32> to vector<32x64xf32>
    %41 = arith.mulf %40, %39 : vector<32x64xf32>
    %cst_17 = arith.constant 0.000000e+00 : f32
    %42 = vector.broadcast %cst_17 : f32 to vector<32x64xf32>
    %43 = arith.maximumf %41, %42 : vector<32x64xf32>
    %c2 = arith.constant 2 : index
    %c0_18 = arith.constant 0 : index
    %c0_19 = arith.constant 0 : index
    %44 = vector.load %arg2[%c2, %c0_18, %c0_19] : memref<4x72x64xf32, #tpu.memory_space<vmem>>, vector<1x72x64xf32>
    %45 = vector.shape_cast %44 : vector<1x72x64xf32> to vector<72x64xf32>
    %46 = vector.extract_strided_slice %45 {offsets = [0, 0], sizes = [64, 64], strides = [1, 1]} : vector<72x64xf32> to vector<64x64xf32>
    %47 = vector.extract_strided_slice %45 {offsets = [64, 0], sizes = [1, 64], strides = [1, 1]} : vector<72x64xf32> to vector<1x64xf32>
    %cst_20 = arith.constant dense<0.000000e+00> : vector<32x64xf32>
    %48 = tpu.matmul %43, %46, %cst_20 {dimension_numbers = #tpu.dot_dimension_numbers<[1], [0], [0], [1], [0, 0, 1, 1], [], []>} : vector<32x64xf32>, vector<64x64xf32>, vector<32x64xf32> -> vector<32x64xf32>
    %49 = vector.broadcast %47 : vector<1x64xf32> to vector<32x64xf32>
    %50 = arith.addf %48, %49 : vector<32x64xf32>
    %cst_21 = arith.constant 3.000000e+00 : f32
    %51 = vector.broadcast %cst_21 : f32 to vector<32x1xf32>
    %52 = arith.addf %2, %51 : vector<32x1xf32>
    %53 = math.rsqrt %52 : vector<32x1xf32>
    %54 = vector.broadcast %53 : vector<32x1xf32> to vector<32x64xf32>
    %55 = arith.mulf %54, %50 : vector<32x64xf32>
    %cst_22 = arith.constant dense<0.000000e+00> : vector<32x64xf32>
    %56 = tpu.matmul %0, %55, %cst_22 {dimension_numbers = #tpu.dot_dimension_numbers<[1], [0], [0], [1], [0, 0, 1, 1], [], []>} : vector<32x32xf32>, vector<32x64xf32>, vector<32x64xf32> -> vector<32x64xf32>
    %cst_23 = arith.constant 3.000000e+00 : f32
    %57 = vector.broadcast %cst_23 : f32 to vector<32x64xf32>
    %58 = arith.mulf %57, %55 : vector<32x64xf32>
    %59 = arith.addf %56, %58 : vector<32x64xf32>
    %60 = vector.broadcast %53 : vector<32x1xf32> to vector<32x64xf32>
    %61 = arith.mulf %60, %59 : vector<32x64xf32>
    %62 = tpu.iota {dimensions = array<i32: 0>} : vector<2x32xi32>
    %63 = tpu.iota {dimensions = array<i32: 1>} : vector<2x32xi32>
    %c16_i32 = arith.constant 16 : i32
    %64 = vector.broadcast %c16_i32 : i32 to vector<2x32xi32>
    %65 = arith.muli %62, %64 : vector<2x32xi32>
    %66 = arith.cmpi sge, %63, %65 : vector<2x32xi32>
    %c1_i32 = arith.constant 1 : i32
    %67 = vector.broadcast %c1_i32 : i32 to vector<2x32xi32>
    %68 = arith.addi %62, %67 : vector<2x32xi32>
    %c16_i32_24 = arith.constant 16 : i32
    %69 = vector.broadcast %c16_i32_24 : i32 to vector<2x32xi32>
    %70 = arith.muli %68, %69 : vector<2x32xi32>
    %71 = arith.cmpi slt, %63, %70 : vector<2x32xi32>
    %72 = arith.andi %66, %71 : vector<2x32xi1>
    %cst_25 = arith.constant 6.250000e-02 : f32
    %cst_26 = arith.constant 0.000000e+00 : f32
    %73 = vector.broadcast %cst_25 : f32 to vector<2x32xf32>
    %74 = vector.broadcast %cst_26 : f32 to vector<2x32xf32>
    %75 = arith.select %72, %73, %74 : vector<2x32xi1>, vector<2x32xf32>
    %cst_27 = arith.constant dense<0.000000e+00> : vector<2x64xf32>
    %76 = tpu.matmul %75, %61, %cst_27 {dimension_numbers = #tpu.dot_dimension_numbers<[1], [0], [0], [1], [0, 0, 1, 1], [], []>} : vector<2x32xf32>, vector<32x64xf32>, vector<2x64xf32> -> vector<2x64xf32>
    %c3 = arith.constant 3 : index
    %c0_28 = arith.constant 0 : index
    %c0_29 = arith.constant 0 : index
    %77 = vector.load %arg2[%c3, %c0_28, %c0_29] : memref<4x72x64xf32, #tpu.memory_space<vmem>>, vector<1x72x64xf32>
    %78 = vector.shape_cast %77 : vector<1x72x64xf32> to vector<72x64xf32>
    %79 = vector.extract_strided_slice %78 {offsets = [0, 0], sizes = [64, 64], strides = [1, 1]} : vector<72x64xf32> to vector<64x64xf32>
    %80 = vector.extract_strided_slice %78 {offsets = [64, 0], sizes = [1, 64], strides = [1, 1]} : vector<72x64xf32> to vector<1x64xf32>
    %cst_30 = arith.constant dense<0.000000e+00> : vector<2x64xf32>
    %81 = tpu.matmul %76, %79, %cst_30 {dimension_numbers = #tpu.dot_dimension_numbers<[1], [0], [0], [1], [0, 0, 1, 1], [], []>} : vector<2x64xf32>, vector<64x64xf32>, vector<2x64xf32> -> vector<2x64xf32>
    %82 = vector.broadcast %80 : vector<1x64xf32> to vector<2x64xf32>
    %83 = arith.addf %81, %82 : vector<2x64xf32>
    %84 = vector.extract_strided_slice %83 {offsets = [0, 0], sizes = [2, 2], strides = [1, 1]} : vector<2x64xf32> to vector<2x2xf32>
    %c0_31 = arith.constant 0 : index
    %c0_32 = arith.constant 0 : index
    %85 = vector.load %arg3[%c0_31, %c0_32] : memref<2x2xf32, #tpu.memory_space<vmem>>, vector<2x2xf32>
    tpu.vector_store %arg3[%c0_31, %c0_32], %84 {strides = array<i32>} : memref<2x2xf32, #tpu.memory_space<vmem>>, vector<2x2xf32>,
    return
  }
}

</mosaic_0001>

<bundles_post_ra>
// kernel: tpu_custom_call.1
= control target key start
LH: loop header
LB: loop body
LE: loop exit
PB: predicated region body
PF: predicated region fallthrough
CT: control target
= control target key end

     0   :  { %vm19_vm0 = vcmask 261120   ;;  %s893_s0 = inlined_call_operand.vmem [shape: f32[32,64], index: 0, kind: input, shape index: {}]   ;;  %s894_s1 = inlined_call_operand.vmem [shape: f32[32,32], index: 1, kind: input, shape index: {}]   ;;  %s895_s2 = inlined_call_operand.vmem [shape: f32[4,72,64], index: 2, kind: input, shape index: {}]   ;;  %s896_s3 = inlined_call_operand.hbm [shape: f32[2,2], index: 3, kind: output, shape index: {}]  }
   0x1   :  { %v43_v0 = vld [vmem:[%s895_s2 + $0x38] sm:$0xff]  ;;  %v686_v1 = vld [vmem:[%s894_s1 + $0x8] sm:$0xff]  ;;  %v42_v2 = vld [vmem:[%s895_s2 + $0x30] sm:$0xff] }
   0x2   :  { %67 = vmatpush.msra.mxu0 %v43_v0  ;;  %v23_v3 = vsel %vm19_vm0, %v686_v1, 0.0  ;;  %v41_v4 = vld [vmem:[%s895_s2 + $0x28] sm:$0xff]  ;;  %v699_v5 = vld [vmem:[%s894_s1 + $0x18] sm:$0xff]  ;;  %v40_v7 = vld [vmem:[%s895_s2 + $0x20] sm:$0xff] }
   0x3   :  { %24 = vadd.xlane.f32.xlu1 %v23_v3  ;;  %v29_v6 = vsel %vm19_vm0, %v699_v5, 0.0  ;;  %v709_v8 = vld [vmem:[%s894_s1] sm:$0xff] }
   0x4   :  { %68 = vmatpush.msra.mxu0 %v42_v2  ;;  %30 = vadd.xlane.f32.xlu0 %v29_v6 }
   0x6   :  { %69 = vmatpush.msra.mxu0 %v41_v4 }
   0x7   :  { %8 = vsyncpa [#allocation3], 0  ;;  %v39_v9 = vld [vmem:[%s895_s2 + $0x18] sm:$0xff]  ;;  %v717_v10 = vld [vmem:[%s894_s1 + $0x10] sm:$0xff]  ;;  %v20_v11 = vsel %vm19_vm0, %v709_v8, 0.0  ;;  %vm46_vm1 = vcmask 523264  }
   0x8   :  { %70 = vmatpush.msra.mxu0 %v40_v7  ;;  %v38_v12 = vld [vmem:[%s895_s2 + $0x10] sm:$0xff]  ;;  %v26_v13 = vsel %vm19_vm0, %v717_v10, 0.0  ;;  %v37_v14 = vld [vmem:[%s895_s2 + $0x8] sm:$0xff]  ;;  %v36_v15 = vld [vmem:[%s895_s2] sm:$0xff]  ;;  %s659_s14 = smov [#allocation2]   ;;  %s540_s17 = sshll.u32 %s896_s3, 4  ;;  %s541_s17 = int_to_ptr.hbm [resolvable:$true] %s540_s17 }
   0x9   :  { %v32_v16 = vld [vmem:[%s893_s0] sm:$0xff]  ;;  %v33_v17 = vld [vmem:[%s893_s0 + $0x8] sm:$0xff]  ;;  %v34_v18 = vld [vmem:[%s893_s0 + $0x10] sm:$0xff]  ;;  %s538_s15 = sshll.u32 %s659_s14, 4  ;;  %s539_s15 = int_to_ptr.vmem [resolvable:$true] %s538_s15 }
   0xa   :  { %71 = vmatpush.msra.mxu0 %v39_v9  ;;  %v35_v19 = vld [vmem:[%s893_s0 + $0x18] sm:$0xff]  ;;  %v44_v49 = vld [vmem:[%s895_s2 + $0x40] sm:$0xff]  ;;  %v562_v55 = vld [vmem:[%s895_s2 + $0x70] sm:$0xff] }
   0xb   :  { %21 = vadd.xlane.f32.xlu1 %v20_v11  ;;  %v564_v51 = vld [vmem:[%s895_s2 + $0x80] sm:$0xff]  ;;  %v563_v52 = vld [vmem:[%s895_s2 + $0x78] sm:$0xff]  ;;  %v45_v56 = vperm.slane %v44_v49, 0  ;;  %v561_v60 = vld [vmem:[%s895_s2 + $0x68] sm:$0xff] }
   0xc   :  { %72 = vmatpush.msra.mxu0 %v38_v12  ;;  %27 = vadd.xlane.f32.xlu0 %v26_v13 }
   0xd   :  { %216 = vmatpush.msra.mxu2 %v564_v51 }
   0xe   :  { %73 = vmatpush.msra.mxu0 %v37_v14  ;;  %v560_v14 = vld [vmem:[%s895_s2 + $0x60] sm:$0xff] }
   0xf   :  { %217 = vmatpush.msra.mxu2 %v563_v52 }
  0x10   :  { %74 = vmatpush.msra.mxu0 %v36_v15  ;;  %v559_v15 = vld [vmem:[%s895_s2 + $0x58] sm:$0xff] }
  0x11   :  { %549 = vmatmul.msk.f32.vlgmr.msra.gmra.mxu0 %vm46_vm1, %v32_v16  ;;  %218 = vmatpush.msra.mxu2 %v562_v55  ;;  %v558_v16 = vld [vmem:[%s895_s2 + $0x50] sm:$0xff] }
  0x13   :  { %219 = vmatpush.msra.mxu2 %v561_v60 }
  0x15   :  { %220 = vmatpush.msra.mxu2 %v560_v14 }
  0x17   :  { %221 = vmatpush.msra.mxu2 %v559_v15 }
  0x19   :  { %550 = vmatmul.msk.f32.gmra.mxu0 %vm46_vm1, %v33_v17  ;;  %222 = vmatpush.msra.mxu2 %v558_v16  ;;  %v557_v17 = vld [vmem:[%s895_s2 + $0x48] sm:$0xff] }
  0x1b   :  { %223 = vmatpush.msra.mxu2 %v557_v17 }
  0x21   :  { %551 = vmatmul.msk.f32.gmra.mxu0 %vm46_vm1, %v34_v18 }
  0x29   :  { %552 = vmatmul.msk.f32.gmra.mxu0 %vm46_vm1, %v35_v19 }
  0x76   :  { %v750_v21 = vpop.xlane.xlu1 %24 }
  0x77   :  { %v748_v20 = vpop.xlane.xlu0 %30  ;;  %v89_v24 = vadd.f32 1.0, %v750_v21 }
  0x78   :  { %v91_v23 = vadd.f32 1.0, %v748_v20 }
  0x79   :  { %vm108_vm4 = vweird.f32 %v89_v24 }
  0x7a   :  { %608 = vrsqrt.f32 %v91_v23  ;;  %vm128_vm2 = vweird.f32 %v91_v23 }
  0x7b   :  { %610 = vrsqrt.f32 %v89_v24 }
  0x7e   :  { %v756_v25 = vpop.xlane.xlu1 %21 }
  0x7f   :  { %v752_v22 = vpop.xlane.xlu0 %27  ;;  %v88_v27 = vadd.f32 1.0, %v756_v25 }
  0x80   :  { %v90_v26 = vadd.f32 1.0, %v752_v22  ;;  %v609_v29 = vpop.eup %608 }
  0x81   :  { %v611_v30 = vpop.eup %610  ;;  %v123_v32 = vmul.f32 %v609_v29, %v91_v23  ;;  %vm129_vm3 = vweird.f32 %v609_v29  ;;  %vm98_vm9 = vweird.f32 %v88_v27 }
  0x82   :  { %612 = vrsqrt.f32 %v90_v26  ;;  %v103_v34 = vmul.f32 %v611_v30, %v89_v24  ;;  %vm109_vm5 = vweird.f32 %v611_v30  ;;  %vm118_vm6 = vweird.f32 %v90_v26  ;;  %vm130_vm8 = vmor %vm128_vm2, %vm129_vm3 }
  0x83   :  { %614 = vrsqrt.f32 %v88_v27  ;;  %v124_v38 = vmul.f32 %v609_v29, %v123_v32  ;;  %vm110_vm11 = vmor %vm108_vm4, %vm109_vm5 }
  0x84   :  { %v104_v39 = vmul.f32 %v611_v30, %v103_v34 }
  0x85   :  { %v125_v42 = vmul.f32 0.5, %v124_v38  ;;  %v240_v38 = vadd.f32 2.0, %v748_v20 }
  0x86   :  { %v105_v44 = vmul.f32 0.5, %v104_v39  ;;  %v239_v39 = vadd.f32 2.0, %v752_v22 }
  0x87   :  { %v126_v47 = vsub.f32 1.5, %v125_v42  ;;  %616 = vrsqrt.f32 %v240_v38  ;;  %vm277_vm14 = vweird.f32 %v240_v38 }
  0x88   :  { %v613_v31 = vpop.eup %612  ;;  %v106_v50 = vsub.f32 1.5, %v105_v44  ;;  %618 = vrsqrt.f32 %v239_v39  ;;  %vm267_vm2 = vweird.f32 %v239_v39 }
  0x89   :  { %v615_v33 = vpop.eup %614  ;;  %v113_v35 = vmul.f32 %v613_v31, %v90_v26  ;;  %vm119_vm7 = vweird.f32 %v613_v31  ;;  %v127_v54 = vmul.f32 %v609_v29, %v126_v47 }
  0x8a   :  { %v93_v37 = vmul.f32 %v615_v33, %v88_v27  ;;  %vm99_vm10 = vweird.f32 %v615_v33  ;;  %v107_v57 = vmul.f32 %v611_v30, %v106_v50  ;;  %vm120_vm12 = vmor %vm118_vm6, %vm119_vm7 }
  0x8b   :  { %v114_v40 = vmul.f32 %v613_v31, %v113_v35  ;;  %v131_v0 = vsel %vm130_vm8, %v609_v29, %v127_v54  ;;  %vm100_vm13 = vmor %vm98_vm9, %vm99_vm10 }
  0x8c   :  { %v94_v41 = vmul.f32 %v615_v33, %v93_v37  ;;  %v111_v4 = vsel %vm110_vm11, %v611_v30, %v107_v57 }
  0x8d   :  { %v115_v43 = vmul.f32 0.5, %v114_v40  ;;  %v238_v40 = vadd.f32 2.0, %v750_v21 }
  0x8e   :  { %v760_v28 = vpop.f32.mrf.mxu0  ;;  %v95_v46 = vmul.f32 0.5, %v94_v41  ;;  %v237_v41 = vadd.f32 2.0, %v756_v25 }
  0x8f   :  { %v116_v48 = vsub.f32 1.5, %v115_v43  ;;  %v77_v11 = vadd.f32 %v760_v28, %v45_v56  ;;  %620 = vrsqrt.f32 %v238_v40  ;;  %v617_v43 = vpop.eup %616  ;;  %vm257_vm5 = vweird.f32 %v238_v40 }
  0x90   :  { %v96_v53 = vsub.f32 1.5, %v95_v46  ;;  %622 = vrsqrt.f32 %v237_v41  ;;  %v619_v44 = vpop.eup %618  ;;  %vm278_vm15 = vweird.f32 %v617_v43  ;;  %vm247_vm8 = vweird.f32 %v237_v41 }
  0x91   :  { %v117_v58 = vmul.f32 %v613_v31, %v116_v48  ;;  %v262_v47 = vmul.f32 %v619_v44, %v239_v39  ;;  %vm268_vm3 = vweird.f32 %v619_v44  ;;  %vm279_vm4 = vmor %vm277_vm14, %vm278_vm15 }
  0x92   :  { %v97_v63 = vmul.f32 %v615_v33, %v96_v53  ;;  %vm269_vm7 = vmor %vm267_vm2, %vm268_vm3 }
  0x93   :  { %v121_v6 = vsel %vm120_vm12, %v613_v31, %v117_v58  ;;  %v263_v53 = vmul.f32 %v619_v44, %v262_v47 }
  0x94   :  { %v101_v9 = vsel %vm100_vm13, %v615_v33, %v97_v63 }
  0x95   :  { %v132_v13 = vmul.f32 %v101_v9, %v77_v11  ;;  %v621_v46 = vpop.eup %620  ;;  %v264_v57 = vmul.f32 0.5, %v263_v53 }
  0x96   :  { %v79_v36 = vpop.f32.mrf.mxu0  ;;  %v623_v49 = vpop.eup %622  ;;  %v252_v50 = vmul.f32 %v621_v46, %v238_v40  ;;  %vm258_vm6 = vweird.f32 %v621_v46 }
  0x97   :  { %v80_v2 = vadd.f32 %v79_v36, %v45_v56  ;;  %v242_v52 = vmul.f32 %v623_v49, %v237_v41  ;;  %v265_v63 = vsub.f32 1.5, %v264_v57  ;;  %vm248_vm9 = vweird.f32 %v623_v49  ;;  %vm259_vm10 = vmor %vm257_vm5, %vm258_vm6 }
  0x98   :  { %v253_v55 = vmul.f32 %v621_v46, %v252_v50  ;;  %vm249_vm11 = vmor %vm247_vm8, %vm248_vm9  ;;  %v380_v57 = vadd.f32 3.0, %v752_v22 }
  0x99   :  { %v133_v12 = vmul.f32 %v111_v4, %v80_v2 }
  0x9a   :  { %v254_v60 = vmul.f32 0.5, %v253_v55  ;;  %vm408_vm14 = vweird.f32 %v380_v57 }
  0x9c   :  { %v255_v2 = vsub.f32 1.5, %v254_v60 }
  0x9e   :  { %v82_v45 = vpop.f32.mrf.mxu0 }
  0x9f   :  { %v83_v61 = vadd.f32 %v82_v45, %v45_v56  ;;  %v272_v45 = vmul.f32 %v617_v43, %v240_v38 }
  0xa1   :  { %v134_v7 = vmul.f32 %v121_v6, %v83_v61  ;;  %v273_v51 = vmul.f32 %v617_v43, %v272_v45 }
  0xa3   :  { %v274_v54 = vmul.f32 0.5, %v273_v51 }
  0xa6   :  { %v85_v59 = vpop.f32.mrf.mxu0 }
  0xa7   :  { %v86_v62 = vadd.f32 %v85_v59, %v45_v56  ;;  %v243_v56 = vmul.f32 %v623_v49, %v242_v52  ;;  %v275_v59 = vsub.f32 1.5, %v274_v54 }
  0xa9   :  { %v135_v3 = vmul.f32 %v131_v0, %v86_v62  ;;  %v244_v61 = vmul.f32 0.5, %v243_v56  ;;  %v565_v62 = vld [vmem:[%s895_s2 + $0x88] sm:$0xff]  ;;  %v381_v56 = vadd.f32 3.0, %v748_v20 }
  0xab   :  { %160 = vmatpush.msrb.mxu0 %v135_v3  ;;  %602 = vmatpush.msra.mxu1 %v135_v3  ;;  %624 = vrsqrt.f32 %v381_v56  ;;  %vm418_vm12 = vweird.f32 %v381_v56 }
  0xac   :  { %626 = vrsqrt.f32 %v380_v57 }
  0xad   :  { %161 = vmatpush.msrb.mxu0 %v134_v7  ;;  %603 = vmatpush.msra.mxu1 %v134_v7 }
  0xaf   :  { %162 = vmatpush.msrb.mxu0 %v133_v12  ;;  %604 = vmatpush.msra.mxu1 %v133_v12 }
  0xb1   :  { %163 = vmatpush.msrb.mxu0 %v132_v13  ;;  %605 = vmatpush.msra.mxu1 %v132_v13 }
  0xb2   :  { %553 = vmatmul.msk.f32.vlgmr.msrb.gmra.mxu0 %vm19_vm0, %v709_v8  ;;  %554 = vmatmul.msk.f32.vlgmr.msra.gmra.mxu1 %vm19_vm0, %v686_v1 }
  0xba   :  { %555 = vmatmul.msk.f32.gmra.mxu1 %vm19_vm0, %v717_v10 }
  0xc2   :  { %556 = vmatmul.msk.f32.gmra.mxu1 %vm19_vm0, %v699_v5 }
 0x12f   :  { %v165_v18 = vpop.f32.mrf.mxu0  ;;  %v168_v19 = vpop.f32.mrf.mxu1 }
 0x130   :  { %v166_v23 = vadd.f32 %v165_v18, %v132_v13  ;;  %v169_v27 = vadd.f32 %v168_v19, %v133_v12  ;;  %v256_v13 = vmul.f32 %v621_v46, %v255_v2  ;;  %v581_v18 = vld [vmem:[%s895_s2 + $0xc8] sm:$0xff]  ;;  %v580_v19 = vld [vmem:[%s895_s2 + $0xc0] sm:$0xff] }
 0x131   :  { %357 = vmatpush.msrb.mxu1 %v581_v18 }
 0x132   :  { %v177_v24 = vmul.f32 %v166_v23, %v101_v9  ;;  %v178_v29 = vmul.f32 %v169_v27, %v111_v4  ;;  %v579_v27 = vld [vmem:[%s895_s2 + $0xb8] sm:$0xff] }
 0x133   :  { %358 = vmatpush.msrb.mxu1 %v580_v19 }
 0x134   :  { %v181_v26 = vmax.f32 %v177_v24, 0.0  ;;  %v182_v30 = vmax.f32 %v178_v29, 0.0 }
 0x135   :  { %359 = vmatpush.msrb.mxu1 %v579_v27 }
 0x136   :  { %566 = vmatmul.msk.f32.vlgmr.msra.gmra.mxu2 %vm46_vm1, %v181_v26  ;;  %v260_v26 = vsel %vm259_vm10, %v621_v46, %v256_v13 }
 0x137   :  { %v171_v28 = vpop.f32.mrf.mxu1 }
 0x138   :  { %v172_v31 = vadd.f32 %v171_v28, %v134_v7  ;;  %v245_v7 = vsub.f32 1.5, %v244_v61  ;;  %v625_v61 = vpop.eup %624 }
 0x139   :  { %vm419_vm13 = vweird.f32 %v625_v61 }
 0x13a   :  { %v179_v32 = vmul.f32 %v172_v31, %v121_v6  ;;  %v266_v6 = vmul.f32 %v619_v44, %v265_v63  ;;  %v246_v17 = vmul.f32 %v623_v49, %v245_v7  ;;  %v413_v63 = vmul.f32 %v625_v61, %v381_v56  ;;  %vm420_vm2 = vmor %vm418_vm12, %vm419_vm13 }
 0x13b   :  { %vm531_vm13 = vcmask 9216  }
 0x13c   :  { %v183_v34 = vmax.f32 %v179_v32, 0.0  ;;  %v270_v16 = vsel %vm269_vm7, %v619_v44, %v266_v6  ;;  %v250_v29 = vsel %vm249_vm11, %v623_v49, %v246_v17  ;;  %v577_v32 = vld [vmem:[%s895_s2 + $0xa8] sm:$0xff]  ;;  %v414_v20 = vmul.f32 %v625_v61, %v413_v63 }
 0x13e   :  { %567 = vmatmul.msk.f32.gmra.mxu2 %vm46_vm1, %v182_v30  ;;  %v578_v30 = vld [vmem:[%s895_s2 + $0xb0] sm:$0xff] }
 0x13f   :  { %v174_v33 = vpop.f32.mrf.mxu1  ;;  %360 = vmatpush.msrb.mxu1 %v578_v30 }
 0x140   :  { %v175_v35 = vadd.f32 %v174_v33, %v135_v3  ;;  %v195_v3 = vperm.slane %v565_v62, 0  ;;  %v576_v33 = vld [vmem:[%s895_s2 + $0xa0] sm:$0xff]  ;;  %v627_v62 = vpop.eup %626 }
 0x141   :  { %361 = vmatpush.msrb.mxu1 %v577_v32  ;;  %v403_v2 = vmul.f32 %v627_v62, %v380_v57  ;;  %vm409_vm15 = vweird.f32 %v627_v62 }
 0x142   :  { %v180_v36 = vmul.f32 %v175_v35, %v131_v0  ;;  %v276_v0 = vmul.f32 %v617_v43, %v275_v59  ;;  %v574_v35 = vld [vmem:[%s895_s2 + $0x90] sm:$0xff]  ;;  %v378_v59 = vadd.f32 3.0, %v756_v25  ;;  %vm410_vm5 = vmor %vm408_vm14, %vm409_vm15 }
 0x143   :  { %362 = vmatpush.msrb.mxu1 %v576_v33  ;;  %v404_v22 = vmul.f32 %v627_v62, %v403_v2 }
 0x144   :  { %v184_v37 = vmax.f32 %v180_v36, 0.0  ;;  %v280_v12 = vsel %vm279_vm4, %v617_v43, %v276_v0  ;;  %vm388_vm6 = vweird.f32 %v378_v59 }
 0x146   :  { %568 = vmatmul.msk.f32.gmra.mxu2 %vm46_vm1, %v183_v34  ;;  %v575_v34 = vld [vmem:[%s895_s2 + $0x98] sm:$0xff] }
 0x147   :  { %363 = vmatpush.msrb.mxu1 %v575_v34 }
 0x149   :  { %364 = vmatpush.msrb.mxu1 %v574_v35 }
 0x14e   :  { %569 = vmatmul.msk.f32.gmra.mxu2 %vm46_vm1, %v184_v37 }
 0x1b9   :  { %v225_v42 = vpop.f32.mrf.mxu2 }
 0x1ba   :  { %v226_v23 = vadd.f32 %v225_v42, %v195_v3 }
 0x1bc   :  { %v281_v31 = vmul.f32 %v250_v29, %v226_v23 }
 0x1be   :  { %v285_v36 = vmul.f32 2.0, %v281_v31 }
 0x1c1   :  { %v228_v48 = vpop.f32.mrf.mxu2 }
 0x1c2   :  { %v229_v14 = vadd.f32 %v228_v48, %v195_v3 }
 0x1c4   :  { %v282_v28 = vmul.f32 %v260_v26, %v229_v14 }
 0x1c6   :  { %v286_v41 = vmul.f32 2.0, %v282_v28 }
 0x1c9   :  { %v231_v58 = vpop.f32.mrf.mxu2 }
 0x1ca   :  { %v232_v9 = vadd.f32 %v231_v58, %v195_v3  ;;  %v379_v58 = vadd.f32 3.0, %v750_v21 }
 0x1cc   :  { %v283_v24 = vmul.f32 %v270_v16, %v232_v9  ;;  %628 = vrsqrt.f32 %v379_v58  ;;  %v415_v9 = vmul.f32 0.5, %v414_v20  ;;  %vm398_vm3 = vweird.f32 %v379_v58 }
 0x1cd   :  { %630 = vrsqrt.f32 %v378_v59 }
 0x1ce   :  { %v287_v46 = vmul.f32 2.0, %v283_v24  ;;  %v416_v13 = vsub.f32 1.5, %v415_v9 }
 0x1d0   :  { %v417_v18 = vmul.f32 %v625_v61, %v416_v13 }
 0x1d1   :  { %v234_v4 = vpop.f32.mrf.mxu2 }
 0x1d2   :  { %v235_v11 = vadd.f32 %v234_v4, %v195_v3  ;;  %v629_v0 = vpop.eup %628  ;;  %v421_v30 = vsel %vm420_vm2, %v625_v61, %v417_v18 }
 0x1d3   :  { %v631_v4 = vpop.eup %630  ;;  %v393_v6 = vmul.f32 %v629_v0, %v379_v58  ;;  %vm399_vm4 = vweird.f32 %v629_v0 }
 0x1d4   :  { %v284_v15 = vmul.f32 %v280_v12, %v235_v11  ;;  %v383_v7 = vmul.f32 %v631_v4, %v378_v59  ;;  %vm389_vm7 = vweird.f32 %v631_v4  ;;  %vm400_vm8 = vmor %vm398_vm3, %vm399_vm4 }
 0x1d5   :  { %v394_v21 = vmul.f32 %v629_v0, %v393_v6  ;;  %vm390_vm9 = vmor %vm388_vm6, %vm389_vm7  ;;  %v658_v6 = vmov 0.0  }
 0x1d6   :  { %301 = vmatpush.msra.mxu3 %v284_v15  ;;  %v288_v51 = vmul.f32 2.0, %v284_v15  ;;  %v384_v11 = vmul.f32 %v631_v4, %v383_v7 }
 0x1d7   :  { %v395_v14 = vmul.f32 0.5, %v394_v21 }
 0x1d8   :  { %302 = vmatpush.msra.mxu3 %v283_v24  ;;  %v385_v15 = vmul.f32 0.5, %v384_v11 }
 0x1d9   :  { %v396_v19 = vsub.f32 1.5, %v395_v14 }
 0x1da   :  { %303 = vmatpush.msra.mxu3 %v282_v28  ;;  %v386_v27 = vsub.f32 1.5, %v385_v15 }
 0x1dc   :  { %304 = vmatpush.msra.mxu3 %v281_v31  ;;  %v397_v31 = vmul.f32 %v629_v0, %v396_v19  ;;  %v387_v35 = vmul.f32 %v631_v4, %v386_v27 }
 0x1dd   :  { %570 = vmatmul.msk.f32.vlgmr.msra.gmra.mxu3 %vm19_vm0, %v709_v8 }
 0x1e5   :  { %571 = vmatmul.msk.f32.gmra.mxu3 %vm19_vm0, %v686_v1 }
 0x1ed   :  { %572 = vmatmul.msk.f32.gmra.mxu3 %vm19_vm0, %v717_v10 }
 0x1f5   :  { %573 = vmatmul.msk.f32.gmra.mxu3 %vm19_vm0, %v699_v5 }
 0x260   :  { %v306_v37 = vpop.f32.mrf.mxu3 }
 0x261   :  { %v307_v38 = vadd.f32 %v306_v37, %v285_v36 }
 0x263   :  { %v318_v39 = vmul.f32 %v307_v38, %v250_v29  ;;  %v401_v38 = vsel %vm400_vm8, %v629_v0, %v397_v31 }
 0x265   :  { %v322_v40 = vmax.f32 %v318_v39, 0.0 }
 0x267   :  { %583 = vmatmul.msk.f32.vlgmr.msrb.gmra.mxu1 %vm46_vm1, %v322_v40  ;;  %v391_v40 = vsel %vm390_vm9, %v631_v4, %v387_v35 }
 0x268   :  { %v309_v42 = vpop.f32.mrf.mxu3 }
 0x269   :  { %v310_v43 = vadd.f32 %v309_v42, %v286_v41 }
 0x26b   :  { %v319_v44 = vmul.f32 %v310_v43, %v260_v26  ;;  %v599_v43 = vld [vmem:[%s895_s2 + $0x110] sm:$0xff] }
 0x26c   :  { %519 = vmatpush.msrb.mxu2 %v599_v43 }
 0x26d   :  { %v323_v45 = vmax.f32 %v319_v44, 0.0  ;;  %v598_v44 = vld [vmem:[%s895_s2 + $0x108] sm:$0xff] }
 0x26e   :  { %520 = vmatpush.msrb.mxu2 %v598_v44 }
 0x26f   :  { %584 = vmatmul.msk.f32.gmra.mxu1 %vm46_vm1, %v323_v45  ;;  %v463_v45 = vlaneseq }
 0x270   :  { %v312_v47 = vpop.f32.mrf.mxu3 }
 0x271   :  { %v313_v48 = vadd.f32 %v312_v47, %v287_v46  ;;  %v594_v46 = vld [vmem:[%s895_s2 + $0xe8] sm:$0xff]  ;;  %v593_v47 = vld [vmem:[%s895_s2 + $0xe0] sm:$0xff] }
 0x273   :  { %v320_v49 = vmul.f32 %v313_v48, %v270_v16  ;;  %v582_v16 = vld [vmem:[%s895_s2 + $0xd0] sm:$0xff]  ;;  %v464_v48 = vshrl.u32 %v463_v45, 7 }
 0x274   :  { %v336_v23 = vperm.slane %v582_v16, 0 }
 0x275   :  { %v324_v50 = vmax.f32 %v320_v49, 0.0 }
 0x277   :  { %585 = vmatmul.msk.f32.gmra.mxu1 %vm46_vm1, %v324_v50  ;;  %v592_v50 = vld [vmem:[%s895_s2 + $0xd8] sm:$0xff] }
 0x278   :  { %v315_v52 = vpop.f32.mrf.mxu3 }
 0x279   :  { %v316_v53 = vadd.f32 %v315_v52, %v288_v51  ;;  %v469_v51 = vadd.s32 1, %v464_v48 }
 0x27b   :  { %v321_v54 = vmul.f32 %v316_v53, %v280_v12  ;;  %v405_v12 = vmul.f32 0.5, %v404_v22  ;;  %v470_v56 = vmul.u32 16, %v469_v51  ;;  %v600_v22 = vld [vmem:[%s895_s2 + $0x118] sm:$0xff] }
 0x27c   :  { %v507_v9 = vperm.slane %v600_v22, 0 }
 0x27d   :  { %v325_v55 = vmax.f32 %v321_v54, 0.0  ;;  %v406_v17 = vsub.f32 1.5, %v405_v12  ;;  %v466_v54 = vand.u32 127, %v463_v45 }
 0x27f   :  { %586 = vmatmul.msk.f32.gmra.mxu1 %vm46_vm1, %v325_v55  ;;  %v407_v26 = vmul.f32 %v627_v62, %v406_v17  ;;  %v467_v55 = vmul.u32 16, %v464_v48  ;;  %vm471_vm11 = vcmp.lt.s32.totalorder %v466_v54, %v470_v56 }
 0x281   :  { %v411_v34 = vsel %vm410_vm5, %v627_v62, %v407_v26  ;;  %vm468_vm10 = vcmp.ge.s32.totalorder %v466_v54, %v467_v55 }
 0x282   :  { %vm472_vm12 = vmand %vm468_vm10, %vm471_vm11 }
 0x283   :  { %v473_v20 = vsel %vm472_vm12, 0.0625, %v658_v6 }
 0x2e4   :  { %v366_v60 = vpop.f32.mrf.mxu1 }
 0x2e5   :  { %v367_v36 = vadd.f32 %v366_v60, %v336_v23 }
 0x2e7   :  { %v422_v41 = vmul.f32 %v391_v40, %v367_v36 }
 0x2e9   :  { %v426_v61 = vmul.f32 3.0, %v422_v41 }
 0x2ec   :  { %v369_v3 = vpop.f32.mrf.mxu1 }
 0x2ed   :  { %v370_v32 = vadd.f32 %v369_v3, %v336_v23 }
 0x2ef   :  { %v423_v39 = vmul.f32 %v401_v38, %v370_v32 }
 0x2f1   :  { %v427_v58 = vmul.f32 3.0, %v423_v39 }
 0x2f4   :  { %v372_v25 = vpop.f32.mrf.mxu1 }
 0x2f5   :  { %v373_v28 = vadd.f32 %v372_v25, %v336_v23 }
 0x2f7   :  { %v424_v37 = vmul.f32 %v411_v34, %v373_v28 }
 0x2f9   :  { %v428_v52 = vmul.f32 3.0, %v424_v37 }
 0x2fc   :  { %v375_v24 = vpop.f32.mrf.mxu1 }
 0x2fd   :  { %v376_v29 = vadd.f32 %v375_v24, %v336_v23 }
 0x2ff   :  { %v425_v33 = vmul.f32 %v421_v30, %v376_v29 }
 0x301   :  { %442 = vmatpush.msrb.mxu3 %v425_v33  ;;  %v429_v53 = vmul.f32 3.0, %v425_v33 }
 0x303   :  { %443 = vmatpush.msrb.mxu3 %v424_v37 }
 0x305   :  { %444 = vmatpush.msrb.mxu3 %v423_v39 }
 0x307   :  { %445 = vmatpush.msrb.mxu3 %v422_v41 }
 0x308   :  { %587 = vmatmul.msk.f32.vlgmr.msrb.gmra.mxu3 %vm19_vm0, %v709_v8 }
 0x310   :  { %588 = vmatmul.msk.f32.gmra.mxu3 %vm19_vm0, %v686_v1  ;;  %v597_v1 = vld [vmem:[%s895_s2 + $0x100] sm:$0xff] }
 0x311   :  { %521 = vmatpush.msrb.mxu2 %v597_v1 }
 0x318   :  { %589 = vmatmul.msk.f32.gmra.mxu3 %vm19_vm0, %v717_v10  ;;  %v595_v10 = vld [vmem:[%s895_s2 + $0xf0] sm:$0xff] }
 0x320   :  { %590 = vmatmul.msk.f32.gmra.mxu3 %vm19_vm0, %v699_v5  ;;  %v596_v5 = vld [vmem:[%s895_s2 + $0xf8] sm:$0xff] }
 0x321   :  { %522 = vmatpush.msrb.mxu2 %v596_v5 }
 0x323   :  { %523 = vmatpush.msrb.mxu2 %v595_v10 }
 0x325   :  { %524 = vmatpush.msrb.mxu2 %v594_v46 }
 0x327   :  { %525 = vmatpush.msrb.mxu2 %v593_v47 }
 0x329   :  { %526 = vmatpush.msrb.mxu2 %v592_v50 }
 0x38b   :  { %v447_v42 = vpop.f32.mrf.mxu3 }
 0x38c   :  { %v448_v0 = vadd.f32 %v447_v42, %v426_v61 }
 0x38e   :  { %v459_v4 = vmul.f32 %v448_v0, %v391_v40 }
 0x393   :  { %v450_v8 = vpop.f32.mrf.mxu3 }
 0x394   :  { %v451_v62 = vadd.f32 %v450_v8, %v427_v58 }
 0x396   :  { %v460_v3 = vmul.f32 %v451_v62, %v401_v38 }
 0x39b   :  { %v453_v49 = vpop.f32.mrf.mxu3 }
 0x39c   :  { %v454_v59 = vadd.f32 %v453_v49, %v428_v52 }
 0x39e   :  { %v461_v2 = vmul.f32 %v454_v59, %v411_v34 }
 0x3a3   :  { %v456_v57 = vpop.f32.mrf.mxu3 }
 0x3a4   :  { %v457_v60 = vadd.f32 %v456_v57, %v429_v53 }
 0x3a6   :  { %v462_v63 = vmul.f32 %v457_v60, %v421_v30 }
 0x3a8   :  { %489 = vmatpush.msra.mxu0 %v462_v63 }
 0x3aa   :  { %490 = vmatpush.msra.mxu0 %v461_v2 }
 0x3ac   :  { %491 = vmatpush.msra.mxu0 %v460_v3 }
 0x3ae   :  { %492 = vmatpush.msra.mxu0 %v459_v4 }
 0x3af   :  { %591 = vmatmul.msk.f32.vlgmr.msra.gmra.mxu0 %vm19_vm0, %v473_v20 }
 0x42c   :  { %v494_v7 = vpop.f32.mrf.mxu0 }
 0x42d   :  { %601 = vmatmul.msk.f32.vlgmr.msrb.gmra.mxu2 %vm46_vm1, %v494_v7 }
 0x4b0   :  { %v528_v21 = vpop.f32.mrf.mxu2 }
 0x4b1   :  { %v529_v11 = vadd.f32 %v528_v21, %v507_v9 }
 0x4b3   :  { %532 = vst.msk [vmem:[#allocation2] sm:$0x3] %vm531_vm13, %v529_v11 }
 0x4b4   :  { %543 = dma.vmem_to_hbm [thread:$0]  %s539_s15, 32, %s541_s17, [#allocation3]  }
 0x4b5   :  { %656 = dma.done.wait [#allocation3], 32  }
 0x4b6   :  { %657 = vsyncadd [#allocation3], 4294967264 }
 0x4b7   :  { %548 = vsyncpa [#allocation3], 1 }

</bundles_post_ra>
